<compile_context>
chip_gen: v7x
topology: tpu7x:2x2x1
jax: 0.10.0
libtpu: 0.0.40
codegen_flags: <defaults>
</compile_context>

<pallas_src>
import functools

import jax
import jax.numpy as jnp
from jax import lax
from jax.experimental import pallas as pl
from jax.experimental.pallas import tpu as pltpu


def _refined_reciprocal(x):
    # EUP approximate reciprocal (separate bundle slot) + one Newton-Raphson
    # step: O(rows) extra VALU work, ~full f32 precision, keeps the O(n^2)
    # divide off the VALU critical path (only multiplies remain there).
    r = pl.reciprocal(x, approx=True)
    return r * (2.0 - x * r)


def _mobility_loss_kernel(block_rows, s_ref, t_ref, mob_row_ref, mob_col_ref,
                          out_ref):
    i = pl.program_id(0)
    row0 = pl.multiple_of(i * block_rows, block_rows)

    s = s_ref[...]                              # (n, m)  resident across grid
    t = t_ref[...]                              # (n, m)  resident across grid
    t_blk = t_ref[pl.ds(row0, block_rows), :]   # (bq, m) row block of t
    s_blk = s_ref[pl.ds(row0, block_rows), :]   # (bq, m) row block of s

    mob_row = mob_row_ref[...].astype(jnp.float32)   # (bq, n) = mob[block, :]
    mob_col = mob_col_ref[...].astype(jnp.float32)   # (n, bq) = mob[:, block]

    # Contract the embedding (lane) axis of both operands -> no XLU transpose.
    contract = (((1,), (1,)), ((), ()))

    # ---- Direction 1: row block i of A = t @ s.T, row softmax, mob[block, :].
    a1 = lax.dot_general(t_blk, s, contract,
                         preferred_element_type=jnp.float32)        # (bq, n)
    rmax = jnp.max(a1, axis=-1, keepdims=True)
    e1 = jnp.exp(a1 - rmax)
    rinv = _refined_reciprocal(jnp.sum(e1, axis=-1, keepdims=True))  # (bq, 1)
    p1 = e1 * rinv
    loss1 = jnp.sum(-mob_row * jnp.log(p1 + 0.0001))

    # ---- Direction 2 (folded): softmax_rows(s @ t.T) paired with mob.T is the
    # column softmax of A paired with mob.  Column block i of A = t @ s_blk.T,
    # softmax over axis 0, paired with mob[:, block] -- no mob.T, no A.T. ----
    a2 = lax.dot_general(t, s_blk, contract,
                         preferred_element_type=jnp.float32)        # (n, bq)
    cmax = jnp.max(a2, axis=0, keepdims=True)
    e2 = jnp.exp(a2 - cmax)
    cinv = _refined_reciprocal(jnp.sum(e2, axis=0, keepdims=True))   # (1, bq)
    p2 = e2 * cinv
    loss2 = jnp.sum(-mob_col * jnp.log(p2 + 0.0001))

    # Lane-dense per-block partial loss (one tiny store per step); summed in
    # the wrapper.
    out_ref[...] = jnp.full(out_ref.shape, loss1 + loss2, dtype=jnp.float32)


def _per_step_bytes(n, m, block_rows):
    # resident s, t + double-buffered mob row/col slabs + f32 temporaries.
    return 4 * (2 * n * m + 4 * block_rows * n + 8 * block_rows * n)


def _choose_block_rows(n, m):
    # Blocks must either tile n by a multiple of 128 or cover the full dim.
    if n <= 512 or n % 128 != 0:
        # TODO(synk): pad n to a multiple of 128 to tile ragged large sizes.
        return n
    budget = 24 * 1024 * 1024   # stay under the default scoped-VMEM limit
    for br in (512, 384, 256, 128):
        if n % br == 0 and _per_step_bytes(n, m, br) <= budget:
            return br
    for br in (512, 384, 256, 128):
        if n % br == 0:
            return br
    return n


def mobility_loss_pallas(s_embeddings, t_embeddings, mob, *, block_rows=None):
    n, m = s_embeddings.shape
    assert t_embeddings.shape == (n, m)
    assert mob.shape == (n, n)

    if block_rows is None:
        block_rows = _choose_block_rows(n, m)
    assert n % block_rows == 0
    nblocks = n // block_rows

    # Only raise the scoped VMEM limit when required; stay well under the
    # 64 MiB physical VMEM of v7x.
    est_bytes = _per_step_bytes(n, m, block_rows)
    cp = dict(dimension_semantics=("parallel",))
    if est_bytes > 24 * 1024 * 1024:
        cp["vmem_limit_bytes"] = min(2 * est_bytes, 56 * 1024 * 1024)

    partials = pl.pallas_call(
        functools.partial(_mobility_loss_kernel, block_rows),
        out_shape=jax.ShapeDtypeStruct((nblocks, 128), jnp.float32),
        grid_spec=pl.GridSpec(
            grid=(nblocks,),
            in_specs=[
                pl.BlockSpec((n, m), lambda i: (0, 0)),            # s (resident)
                pl.BlockSpec((n, m), lambda i: (0, 0)),            # t (resident)
                pl.BlockSpec((block_rows, n), lambda i: (i, 0)),   # mob rows
                pl.BlockSpec((n, block_rows), lambda i: (0, i)),   # mob cols
            ],
            out_specs=pl.BlockSpec((1, 128), lambda i: (i, 0)),
        ),
        compiler_params=pltpu.CompilerParams(**cp),
    )(s_embeddings, t_embeddings, mob, mob)

    return jnp.sum(partials[:, 0])


def mobility_loss_ref(s, t, mob):
    # Pure-JAX reference mirroring the PyTorch code, for a sanity check.
    a = t @ s.T
    p1 = jax.nn.softmax(a, axis=-1)
    loss = jnp.sum(-mob * jnp.log(p1 + 0.0001))
    b = s @ t.T
    p2 = jax.nn.softmax(b, axis=-1)
    loss += jnp.sum(-mob.T * jnp.log(p2 + 0.0001))
    return loss


if __name__ == "__main__":
    # MobilityLoss has no learnable parameters; only inputs are needed.
    key = jax.random.PRNGKey(0)
    k1, k2, k3, k4 = jax.random.split(key, 4)

    # Case 1: toy shape (single full block, mirrors the original module usage).
    n, m = 8, 32
    out1 = jax.random.normal(k1, (n, m), dtype=jnp.float32)      # s_embeddings
    out2 = jax.random.normal(k2, (n, m), dtype=jnp.float32)      # t_embeddings
    label = jax.random.uniform(k3, (n, n), dtype=jnp.float32)    # mobility matrix

    loss = jax.block_until_ready(mobility_loss_pallas(out1, out2, label))
    ref = mobility_loss_ref(out1, out2, label)
    assert jnp.allclose(loss, ref, rtol=1e-3, atol=1e-3), (loss, ref)

    # Case 2: exercise the tiled multi-block ("parallel" grid) path.
    n2, m2 = 256, 64
    k5, k6, k7 = jax.random.split(k4, 3)
    s2 = jax.random.normal(k5, (n2, m2), dtype=jnp.float32)
    t2 = jax.random.normal(k6, (n2, m2), dtype=jnp.float32)
    mob2 = jax.random.uniform(k7, (n2, n2), dtype=jnp.float32)

    loss2 = jax.block_until_ready(
        mobility_loss_pallas(s2, t2, mob2, block_rows=128))
    ref2 = mobility_loss_ref(s2, t2, mob2)
    assert jnp.allclose(loss2, ref2, rtol=1e-3, atol=1e-3), (loss2, ref2)

    print("KERNEL_OK")
</pallas_src>

<mosaic_0001>
module attributes {stable_mosaic.version = 11 : i64} {
  func.func @_mobility_loss_kernel(%arg0: i32, %arg1: memref<8x32xf32, #tpu.memory_space<vmem>>, %arg2: memref<8x32xf32, #tpu.memory_space<vmem>>, %arg3: memref<8x8xf32, #tpu.memory_space<vmem>>, %arg4: memref<8x8xf32, #tpu.memory_space<vmem>>, %arg5: memref<1x128xf32, #tpu.memory_space<vmem>>) attributes {dimension_semantics = [#tpu.dimension_semantics<parallel>], iteration_bounds = array<i64: 1>, scalar_prefetch = 0 : i64, scratch_operands = 0 : i64, tpu.core_type = #tpu.core_type<tc>, window_params = [{pipeline_mode = #tpu.pipeline_mode<synchronous>, transform_indices = @transform_0, window_bounds = array<i64: 8, 32>}, {pipeline_mode = #tpu.pipeline_mode<synchronous>, transform_indices = @transform_1, window_bounds = array<i64: 8, 32>}, {transform_indices = @transform_2, window_bounds = array<i64: 8, 8>}, {transform_indices = @transform_3, window_bounds = array<i64: 8, 8>}, {transform_indices = @transform_4, window_bounds = array<i64: 1, 128>}]} {
    %c8_i32 = arith.constant 8 : i32
    %0 = arith.muli %arg0, %c8_i32 : i32
    %1 = tpu.assume_multiple %0, 8 : i32
    %c0 = arith.constant 0 : index
    %c0_0 = arith.constant 0 : index
    %2 = vector.load %arg1[%c0, %c0_0] : memref<8x32xf32, #tpu.memory_space<vmem>>, vector<8x32xf32>
    %c0_1 = arith.constant 0 : index
    %c0_2 = arith.constant 0 : index
    %3 = vector.load %arg2[%c0_1, %c0_2] : memref<8x32xf32, #tpu.memory_space<vmem>>, vector<8x32xf32>
    %4 = arith.index_cast %1 : i32 to index
    %c0_3 = arith.constant 0 : index
    %5 = vector.load %arg2[%4, %c0_3] : memref<8x32xf32, #tpu.memory_space<vmem>>, vector<8x32xf32>
    %6 = arith.index_cast %1 : i32 to index
    %c0_4 = arith.constant 0 : index
    %7 = vector.load %arg1[%6, %c0_4] : memref<8x32xf32, #tpu.memory_space<vmem>>, vector<8x32xf32>
    %c0_5 = arith.constant 0 : index
    %c0_6 = arith.constant 0 : index
    %8 = vector.load %arg3[%c0_5, %c0_6] : memref<8x8xf32, #tpu.memory_space<vmem>>, vector<8x8xf32>
    %c0_7 = arith.constant 0 : index
    %c0_8 = arith.constant 0 : index
    %9 = vector.load %arg4[%c0_7, %c0_8] : memref<8x8xf32, #tpu.memory_space<vmem>>, vector<8x8xf32>
    %cst = arith.constant dense<0.000000e+00> : vector<8x8xf32>
    %10 = tpu.matmul %5, %2, %cst {dimension_numbers = #tpu.dot_dimension_numbers<[1], [1], [0], [0], [0, 0, 1, 0], [], []>} : vector<8x32xf32>, vector<8x32xf32>, vector<8x8xf32> -> vector<8x8xf32>
    %cst_9 = arith.constant dense<0xFF800000> : vector<8xf32>
    %11 = vector.multi_reduction <maximumf>, %10, %cst_9 [1] : vector<8x8xf32> to vector<8xf32>
    %12 = vector.shape_cast %11 : vector<8xf32> to vector<8x1xf32>
    %13 = vector.broadcast %12 : vector<8x1xf32> to vector<8x8xf32>
    %14 = arith.subf %10, %13 : vector<8x8xf32>
    %15 = math.exp %14 : vector<8x8xf32>
    %cst_10 = arith.constant dense<0.000000e+00> : vector<8xf32>
    %16 = vector.multi_reduction <add>, %15, %cst_10 [1] : vector<8x8xf32> to vector<8xf32>
    %17 = vector.shape_cast %16 : vector<8xf32> to vector<8x1xf32>
    %18 = tpu.reciprocal %17 {approx = true} : vector<8x1xf32> -> vector<8x1xf32>
    %19 = arith.mulf %17, %18 : vector<8x1xf32>
    %cst_11 = arith.constant 2.000000e+00 : f32
    %20 = vector.broadcast %cst_11 : f32 to vector<8x1xf32>
    %21 = arith.subf %20, %19 : vector<8x1xf32>
    %22 = arith.mulf %18, %21 : vector<8x1xf32>
    %23 = vector.broadcast %22 : vector<8x1xf32> to vector<8x8xf32>
    %24 = arith.mulf %15, %23 : vector<8x8xf32>
    %cst_12 = arith.constant 0.000000e+00 : f32
    %25 = vector.broadcast %cst_12 : f32 to vector<8x8xf32>
    %26 = arith.subf %25, %8 : vector<8x8xf32>
    %cst_13 = arith.constant 9.99999974E-5 : f32
    %27 = vector.broadcast %cst_13 : f32 to vector<8x8xf32>
    %28 = arith.addf %24, %27 : vector<8x8xf32>
    %29 = math.log %28 : vector<8x8xf32>
    %30 = arith.mulf %26, %29 : vector<8x8xf32>
    %31 = vector.shape_cast %30 : vector<8x8xf32> to vector<1x8x8xf32>
    %cst_14 = arith.constant dense<0.000000e+00> : vector<1xf32>
    %32 = vector.multi_reduction <add>, %31, %cst_14 [1, 2] : vector<1x8x8xf32> to vector<1xf32>
    %33 = vector.shape_cast %32 : vector<1xf32> to vector<1x1x1xf32>
    %34 = vector.extract %33[0, 0, 0] : f32 from vector<1x1x1xf32>
    %cst_15 = arith.constant dense<0.000000e+00> : vector<8x8xf32>
    %35 = tpu.matmul %3, %7, %cst_15 {dimension_numbers = #tpu.dot_dimension_numbers<[1], [1], [0], [0], [0, 0, 1, 0], [], []>} : vector<8x32xf32>, vector<8x32xf32>, vector<8x8xf32> -> vector<8x8xf32>
    %cst_16 = arith.constant dense<0xFF800000> : vector<8xf32>
    %36 = vector.multi_reduction <maximumf>, %35, %cst_16 [0] : vector<8x8xf32> to vector<8xf32>
    %37 = vector.shape_cast %36 : vector<8xf32> to vector<1x8xf32>
    %38 = vector.broadcast %37 : vector<1x8xf32> to vector<8x8xf32>
    %39 = arith.subf %35, %38 : vector<8x8xf32>
    %40 = math.exp %39 : vector<8x8xf32>
    %cst_17 = arith.constant dense<0.000000e+00> : vector<8xf32>
    %41 = vector.multi_reduction <add>, %40, %cst_17 [0] : vector<8x8xf32> to vector<8xf32>
    %42 = vector.shape_cast %41 : vector<8xf32> to vector<1x8xf32>
    %43 = tpu.reciprocal %42 {approx = true} : vector<1x8xf32> -> vector<1x8xf32>
    %44 = arith.mulf %42, %43 : vector<1x8xf32>
    %cst_18 = arith.constant 2.000000e+00 : f32
    %45 = vector.broadcast %cst_18 : f32 to vector<1x8xf32>
    %46 = arith.subf %45, %44 : vector<1x8xf32>
    %47 = arith.mulf %43, %46 : vector<1x8xf32>
    %48 = vector.broadcast %47 : vector<1x8xf32> to vector<8x8xf32>
    %49 = arith.mulf %40, %48 : vector<8x8xf32>
    %cst_19 = arith.constant 0.000000e+00 : f32
    %50 = vector.broadcast %cst_19 : f32 to vector<8x8xf32>
    %51 = arith.subf %50, %9 : vector<8x8xf32>
    %cst_20 = arith.constant 9.99999974E-5 : f32
    %52 = vector.broadcast %cst_20 : f32 to vector<8x8xf32>
    %53 = arith.addf %49, %52 : vector<8x8xf32>
    %54 = math.log %53 : vector<8x8xf32>
    %55 = arith.mulf %51, %54 : vector<8x8xf32>
    %56 = vector.shape_cast %55 : vector<8x8xf32> to vector<1x8x8xf32>
    %cst_21 = arith.constant dense<0.000000e+00> : vector<1xf32>
    %57 = vector.multi_reduction <add>, %56, %cst_21 [1, 2] : vector<1x8x8xf32> to vector<1xf32>
    %58 = vector.shape_cast %57 : vector<1xf32> to vector<1x1x1xf32>
    %59 = vector.extract %58[0, 0, 0] : f32 from vector<1x1x1xf32>
    %60 = arith.addf %34, %59 : f32
    %61 = vector.broadcast %60 : f32 to vector<1x128xf32>
    %c0_22 = arith.constant 0 : index
    %c0_23 = arith.constant 0 : index
    %62 = vector.load %arg5[%c0_22, %c0_23] : memref<1x128xf32, #tpu.memory_space<vmem>>, vector<1x128xf32>
    tpu.vector_store %arg5[%c0_22, %c0_23], %61 {strides = array<i32>} : memref<1x128xf32, #tpu.memory_space<vmem>>, vector<1x128xf32>,
    return
  }
  func.func @transform_0(%arg0: i32) -> (i32, i32) {
    %c0_i32 = arith.constant 0 : i32
    %c0_i32_0 = arith.constant 0 : i32
    %c0_i32_1 = arith.constant 0 : i32
    return %c0_i32, %c0_i32_0 : i32, i32
  }
  func.func @transform_1(%arg0: i32) -> (i32, i32) {
    %c0_i32 = arith.constant 0 : i32
    %c0_i32_0 = arith.constant 0 : i32
    %c0_i32_1 = arith.constant 0 : i32
    return %c0_i32, %c0_i32_0 : i32, i32
  }
  func.func @transform_2(%arg0: i32) -> (i32, i32) {
    %c0_i32 = arith.constant 0 : i32
    %c0_i32_0 = arith.constant 0 : i32
    return %arg0, %c0_i32 : i32, i32
  }
  func.func @transform_3(%arg0: i32) -> (i32, i32) {
    %c0_i32 = arith.constant 0 : i32
    %c0_i32_0 = arith.constant 0 : i32
    return %c0_i32, %arg0 : i32, i32
  }
  func.func @transform_4(%arg0: i32) -> (i32, i32) {
    %c0_i32 = arith.constant 0 : i32
    %c0_i32_0 = arith.constant 0 : i32
    return %arg0, %c0_i32 : i32, i32
  }
}

</mosaic_0001>

<bundles_post_ra>
// kernel: tpu_custom_call.1
= control target key start
LH: loop header
LB: loop body
LE: loop exit
PB: predicated region body
PF: predicated region fallthrough
CT: control target
= control target key end

     0   :  { %9 = vsyncpa [#allocation3], 0  ;;  %s523_s0 = inlined_call_operand.hbm [shape: f32[8,32], index: 0, kind: input, shape index: {}]   ;;  %s524_s1 = inlined_call_operand.hbm [shape: f32[8,32], index: 1, kind: input, shape index: {}]   ;;  %s525_s2 = inlined_call_operand.hbm [shape: f32[8,8], index: 2, kind: input, shape index: {}]   ;;  %s526_s3 = inlined_call_operand.vmem [shape: f32[8,8], index: 3, kind: input, shape index: {}]   ;;  %s527_s4 = inlined_call_operand.hbm [shape: f32[1,128], index: 4, kind: output, shape index: {}]  }
   0x1   :  { %10 = vsyncpa [#allocation6], 0 }
   0x2   :  { %11 = vsyncpa [#allocation4], 0  ;;  %s435_s15 = smov [#allocation5]   ;;  %s436_s17 = smov [#allocation2]  }
   0x3   :  { %s28_s16 = sshll.u32 %s435_s15, 4  ;;  %s18_s18 = sshll.u32 %s436_s17, 4  ;;  %s29_s16 = int_to_ptr.vmem [resolvable:$true] %s28_s16  ;;  %s19_s18 = int_to_ptr.vmem [resolvable:$true] %s18_s18 }
   0x4   :  { %s341_s21 = scalar_lea.hbm %s524_s1, 128 }
   0x5   :  { %p342_p0 = scmp.ne.s32.totalorder %s524_s1, %s341_s21  ;;  %p345_p1 = scmp.lt.u32.totalorder %s341_s21, %s524_s1 }
   0x7   :  { %p347_p2 = pnand %p345_p1, %p342_p0 }
   0x9   :  { %350 = shalt.err (!%p347_p2)
}
   0xa   :  { %s351_s26 = scalar_lea.vmem %s29_s16, 128  ;;  %p356_p4 = scmp.lt.s32.totalorder %s29_s16, %s29_s16 }
   0xb   :  { %p352_p3 = scmp.ne.s32.totalorder %s29_s16, %s351_s26  ;;  %p357_p5 = scmp.lt.s32.totalorder %s351_s26, %s351_s26 }
   0xd   :  { %p358_p6 = por %p357_p5, %p356_p4 }
   0xf   :  { %p359_p7 = pnand %p358_p6, %p352_p3 }
  0x11   :  { %362 = shalt.err (!%p359_p7)
}
  0x12   :  { %31 = dma.hbm_to_vmem [thread:$0]  %s524_s1, 128, %s29_s16, [#allocation6]  }
  0x13   :  { %s363_s5 = scalar_lea.hbm %s523_s0, 128 }
  0x14   :  { %p364_p8 = scmp.ne.s32.totalorder %s523_s0, %s363_s5  ;;  %p367_p9 = scmp.lt.u32.totalorder %s363_s5, %s523_s0 }
  0x16   :  { %p369_p10 = pnand %p367_p9, %p364_p8 }
  0x18   :  { %372 = shalt.err (!%p369_p10)
}
  0x19   :  { %s373_s10 = scalar_lea.vmem %s19_s18, 128  ;;  %p378_p12 = scmp.lt.s32.totalorder %s19_s18, %s19_s18 }
  0x1a   :  { %p374_p11 = scmp.ne.s32.totalorder %s19_s18, %s373_s10  ;;  %p379_p13 = scmp.lt.s32.totalorder %s373_s10, %s373_s10 }
  0x1c   :  { %p380_p0 = por %p379_p13, %p378_p12 }
  0x1e   :  { %p381_p1 = pnand %p380_p0, %p374_p11 }
  0x20   :  { %384 = shalt.err (!%p381_p1)
}
  0x21   :  { %21 = dma.hbm_to_vmem [thread:$0]  %s523_s0, 128, %s19_s18, [#allocation3]  }
  0x22   :  { %s437_s12 = smov [#allocation7]   ;;  %s385_s16 = scalar_lea.hbm %s525_s2, 128 }
  0x23   :  { %s38_s13 = sshll.u32 %s437_s12, 4  ;;  %p386_p2 = scmp.ne.s32.totalorder %s525_s2, %s385_s16  ;;  %s39_s13 = int_to_ptr.vmem [resolvable:$true] %s38_s13 }
  0x24   :  { %p389_p3 = scmp.lt.u32.totalorder %s385_s16, %s525_s2 }
  0x26   :  { %p391_p4 = pnand %p389_p3, %p386_p2 }
  0x28   :  { %394 = shalt.err (!%p391_p4)
}
  0x29   :  { %s395_s22 = scalar_lea.vmem %s39_s13, 128  ;;  %p400_p6 = scmp.lt.s32.totalorder %s39_s13, %s39_s13 }
  0x2a   :  { %p396_p5 = scmp.ne.s32.totalorder %s39_s13, %s395_s22  ;;  %p401_p7 = scmp.lt.s32.totalorder %s395_s22, %s395_s22 }
  0x2c   :  { %p402_p8 = por %p401_p7, %p400_p6 }
  0x2e   :  { %p403_p9 = pnand %p402_p8, %p396_p5 }
  0x30   :  { %406 = shalt.err (!%p403_p9)
}
  0x31   :  { %41 = dma.hbm_to_vmem [thread:$0]  %s525_s2, 128, %s39_s13, [#allocation6]  }
  0x32   :  { %429 = dma.done.wait [#allocation3], 128  }
  0x33   :  { %430 = vsyncadd [#allocation3], 4294967168 }
  0x34   :  { %431 = dma.done.wait [#allocation6], 256  }
  0x35   :  { %432 = vsyncadd [#allocation6], 4294967040  ;;  %v438_v0 = vmov 0.0   ;;  %vm439_vm0 = vmmov 0   ;;  %vm62_vm1 = vcmask 261120   ;;  %v54_v1 = vld [vmem:[#allocation2] sm:$0xff] }
  0x36   :  { %309 = vmatprep.subr.mxu0 %v438_v0  ;;  %311 = vmatprep.mubr.msk.f32.mxu0 %vm439_vm0, %v438_v0  ;;  %v57_v2 = vld [vmem:[#allocation5] sm:$0xff]  ;;  %vm139_vm2 = vcmask 64512   ;;  %v60_v43 = vld [vmem:[#allocation7] sm:$0xff]  ;;  %v61_v45 = vld [vmem:[%s526_s3] sm:$0xff]  ;;  %s440_s24 = smov [#allocation8]  }
  0x37   :  { %314 = vmatprep.subr.mxu1 %v438_v0  ;;  %316 = vmatprep.mubr.msk.f32.mxu1 %vm439_vm0, %v438_v0  ;;  %v154_v46 = vsub.f32 0.0, %v60_v43  ;;  %v267_v49 = vsub.f32 0.0, %v61_v45  ;;  %s291_s25 = sshll.u32 %s440_s24, 4  ;;  %s292_s25 = int_to_ptr.vmem [resolvable:$true] %s291_s25 }
  0x38   :  { %310 = vmatpush3.xpose.msk.msra.mxu0 %vm62_vm1, %v54_v1  ;;  %315 = vmatpush3.xpose.msk.msra.mxu1 %vm62_vm1, %v54_v1  ;;  %s407_s28 = scalar_lea.vmem %s292_s25, 16  ;;  %s411_s29 = scalar_lea.vmem %s292_s25, 32 }
  0x39   :  { %p408_p10 = scmp.ne.s32.totalorder %s292_s25, %s407_s28  ;;  %p412_p11 = scmp.lt.s32.totalorder %s292_s25, %s292_s25 }
  0x3a   :  { %p413_p12 = scmp.lt.s32.totalorder %s411_s29, %s407_s28 }
  0x3b   :  { %312 = vmatmul.mubr.msk.f32.vlgmr.msra.gmra.mrb[0].mxu0 %vm62_vm1, %v57_v2  ;;  %317 = vmatmul.mubr.msk.f32.vlgmr.msra.gmra.mrb[0].mxu1 %vm62_vm1, %v57_v2 }
  0x3c   :  { %p414_p13 = por %p413_p12, %p412_p11 }
  0x3e   :  { %p415_p0 = pnand %p414_p13, %p408_p10 }
 0x10e   :  { %v135_v3 = vpop.f32.mrb[0].mxu0  ;;  %v241_v6 = vpop.f32.mrb[0].mxu1 }
 0x10f   :  { %v313_v4 = vpop.f32.mrb[1].mxu0  ;;  %v140_v5 = vsel %vm139_vm2, %v135_v3, -inf  ;;  %v318_v7 = vpop.f32.mrb[1].mxu1  ;;  %v245_v13 = vsel %vm139_vm2, %v241_v6, -inf }
 0x110   :  { %141 = vmax.xlane.f32.xlu0 %v140_v5  ;;  %v246_v14 = vrot.slane %v245_v13, 4 }
 0x112   :  { %v247_v15 = vmax.f32 %v245_v13, %v246_v14 }
 0x114   :  { %v248_v16 = vrot.slane %v247_v15, 2 }
 0x116   :  { %v249_v17 = vmax.f32 %v247_v15, %v248_v16 }
 0x118   :  { %v250_v18 = vrot.slane %v249_v17, 1 }
 0x11a   :  { %v251_v19 = vmax.f32 %v249_v17, %v250_v18 }
 0x11c   :  { %v252_v20 = vsub.f32 %v241_v6, %v251_v19 }
 0x11e   :  { %v253_v21 = vmul.f32 1.442695, %v252_v20 }
 0x19d   :  { %v142_v8 = vpop.xlane.xlu0 %141 }
 0x19e   :  { %v143_v9 = vsub.f32 %v135_v3, %v142_v8 }
 0x1a0   :  { %v144_v10 = vmul.f32 1.442695, %v143_v9 }
 0x1a2   :  { %329 = vpow2.f32 %v144_v10 }
 0x1a3   :  { %331 = vpow2.f32 %v253_v21 }
 0x1ac   :  { %v330_v11 = vpop.eup %329 }
 0x1ad   :  { %v146_v12 = vsel %vm139_vm2, %v330_v11, 0.0  ;;  %v332_v22 = vpop.eup %331 }
 0x1ae   :  { %147 = vadd.xlane.f32.xlu0 %v146_v12  ;;  %v255_v23 = vsel %vm139_vm2, %v332_v22, 0.0 }
 0x1af   :  { %v256_v24 = vrot.slane %v255_v23, 4 }
 0x1b1   :  { %v257_v25 = vadd.f32 %v256_v24, %v255_v23 }
 0x1b3   :  { %v258_v26 = vrot.slane %v257_v25, 2 }
 0x1b5   :  { %v259_v27 = vadd.f32 %v258_v26, %v257_v25 }
 0x1b7   :  { %v260_v28 = vrot.slane %v259_v27, 1 }
 0x1b9   :  { %v261_v29 = vadd.f32 %v260_v28, %v259_v27 }
 0x1bb   :  { %333 = vrcp.f32 %v261_v29 }
 0x1c5   :  { %v334_v30 = vpop.eup %333 }
 0x1c6   :  { %v263_v32 = vmul.f32 %v334_v30, %v261_v29 }
 0x1c8   :  { %v264_v33 = vsub.f32 2.0, %v263_v32 }
 0x1ca   :  { %v265_v34 = vmul.f32 %v334_v30, %v264_v33 }
 0x1cc   :  { %v266_v37 = vmul.f32 %v332_v22, %v265_v34 }
 0x1ce   :  { %v268_v40 = vadd.f32 0.0001, %v266_v37 }
 0x23b   :  { %v148_v31 = vpop.xlane.xlu0 %147 }
 0x23c   :  { %335 = vrcp.f32 %v148_v31 }
 0x23d   :  { %337 = vlog2.f32 %v268_v40 }
 0x246   :  { %v336_v35 = vpop.eup %335 }
 0x247   :  { %v150_v36 = vmul.f32 %v336_v35, %v148_v31  ;;  %v338_v44 = vpop.eup %337 }
 0x248   :  { %v270_v50 = vmul.f32 0.6931472, %v338_v44 }
 0x249   :  { %v151_v38 = vsub.f32 2.0, %v150_v36 }
 0x24a   :  { %v271_v53 = vmul.f32 %v270_v50, %v267_v49 }
 0x24b   :  { %v152_v39 = vmul.f32 %v336_v35, %v151_v38 }
 0x24c   :  { %v272_v54 = vsel %vm139_vm2, %v271_v53, 0.0 }
 0x24d   :  { %v153_v41 = vmul.f32 %v330_v11, %v152_v39 }
 0x24f   :  { %v155_v42 = vadd.f32 0.0001, %v153_v41 }
 0x251   :  { %339 = vlog2.f32 %v155_v42 }
 0x25b   :  { %v340_v47 = vpop.eup %339 }
 0x25c   :  { %v157_v48 = vmul.f32 0.6931472, %v340_v47 }
 0x25e   :  { %v158_v51 = vmul.f32 %v157_v48, %v154_v46 }
 0x260   :  { %v159_v52 = vsel %vm139_vm2, %v158_v51, 0.0 }
 0x261   :  { %160 = vadd.xlane.f32.xlu1 %v159_v52 }
 0x265   :  { %273 = vadd.xlane.f32.xlu1 %v272_v54 }
 0x2ee   :  { %v161_v55 = vpop.xlane.xlu1 %160 }
 0x2ef   :  { %v162_v56 = vrot.slane %v161_v55, 4 }
 0x2f1   :  { %v163_v57 = vadd.f32 %v162_v56, %v161_v55 }
 0x2f2   :  { %v274_v58 = vpop.xlane.xlu1 %273 }
 0x2f3   :  { %v164_v59 = vrot.slane %v163_v57, 2  ;;  %v275_v60 = vrot.slane %v274_v58, 4 }
 0x2f5   :  { %v276_v61 = vadd.f32 %v275_v60, %v274_v58  ;;  %v165_v62 = vadd.f32 %v164_v59, %v163_v57 }
 0x2f7   :  { %v277_v63 = vrot.slane %v276_v61, 2  ;;  %v166_v0 = vrot.slane %v165_v62, 1 }
 0x2f9   :  { %v278_v1 = vadd.f32 %v277_v63, %v276_v61  ;;  %v167_v2 = vadd.f32 %v166_v0, %v165_v62 }
 0x2fb   :  { %319 = vpush %v167_v2  ;;  %v279_v3 = vrot.slane %v278_v1, 1 }
 0x2fd   :  { %v280_v4 = vadd.f32 %v279_v3, %v278_v1 }
 0x2ff   :  { %321 = vpush %v280_v4 }
 0x32c   :  { %s320_s3 = spop %319 }
 0x330   :  { %s322_s26 = spop %321 }
 0x331   :  { %s282_s27 = sadd.f32 %s322_s26, %s320_s3 }
 0x333   :  { %v283_v5 = vstv %s282_s27 }
 0x334   :  { %284 = vst [vmem:[#allocation8] sm:$0x1] %v283_v5 }
 0x335   :  { %418 = shalt.err (!%p415_p0)
}
 0x336   :  { %s419_s6 = scalar_lea.hbm %s527_s4, 16 }
 0x337   :  { %p420_p1 = scmp.ne.s32.totalorder %s527_s4, %s419_s6  ;;  %p423_p2 = scmp.lt.u32.totalorder %s419_s6, %s527_s4 }
 0x339   :  { %p425_p3 = pnand %p423_p2, %p420_p1 }
 0x33b   :  { %428 = shalt.err (!%p425_p3)
}
 0x33c   :  { %294 = dma.vmem_to_hbm [thread:$0]  %s292_s25, 16, %s527_s4, [#allocation4]  }
 0x33d   :  { %433 = dma.done.wait [#allocation4], 16  }
 0x33e   :  { %434 = vsyncadd [#allocation4], 4294967280 }
 0x33f   :  { %298 = vsyncpa [#allocation3], 1 }
 0x340   :  { %299 = vsyncpa [#allocation6], 1 }
 0x341   :  { %300 = vsyncpa [#allocation4], 1 }

</bundles_post_ra>
